<compile_context>
chip_gen: v7x
topology: tpu7x:2x2x1
jax: 0.10.0
libtpu: 0.0.40
codegen_flags: <defaults>
</compile_context>

<pallas_src>
import functools

import jax
import jax.numpy as jnp
from jax.experimental import pallas as pl
from jax.experimental.pallas import tpu as pltpu


def _round_up(x, m):
    return ((x + m - 1) // m) * m


# ---------------------------------------------------------------------------
# Fused kernel: both SAGE layers for one node type (one grid step).
#   y1  = x @ [W1_l | W1_r]                       (N, 2*Hp)
#   h   = relu(A @ y1[:, :Hp] + y1[:, Hp:] + b1)  (N, Hp)   -- stays in VMEM
#   y2  = h @ [W2_l | W2_r]                       (N, 2*Op)
#   out = A @ y2[:, :Op] + y2[:, Op:] + b2        (N, Op)
# ---------------------------------------------------------------------------
def _gnn_kernel(a_ref, x_ref, w1_ref, b1_ref, w2_ref, b2_ref, o_ref, *, h_pad, o_pad):
    a = a_ref[...]                       # (N, N) row-normalized adjacency
    x = x_ref[0]                         # (N, C)

    # ----- layer 1 -----
    y1 = jnp.dot(x, w1_ref[...], preferred_element_type=jnp.float32)   # (N, 2*Hp)
    h = (
        jnp.dot(a, y1[:, :h_pad], preferred_element_type=jnp.float32)  # A @ (X @ W_l)
        + y1[:, h_pad:]                                                 # X @ W_r
        + b1_ref[...]
    )
    h = jnp.maximum(h, 0.0)

    # ----- layer 2 -----
    y2 = jnp.dot(h, w2_ref[...], preferred_element_type=jnp.float32)   # (N, 2*Op)
    out = (
        jnp.dot(a, y2[:, :o_pad], preferred_element_type=jnp.float32)
        + y2[:, o_pad:]
        + b2_ref[...]
    )
    o_ref[0] = out.astype(o_ref.dtype)


def _pad2(w, rows, cols):
    return jnp.zeros((rows, cols), w.dtype).at[: w.shape[0], : w.shape[1]].set(w)


# ---------------------------------------------------------------------------
# Glue: build row-normalized dense adjacency from an edge_index [2, E]
# (src -> dst messages, mean aggregation per destination node).
# ---------------------------------------------------------------------------
def build_mean_adjacency(edge_index, num_nodes):
    src, dst = edge_index[0], edge_index[1]
    A = jnp.zeros((num_nodes, num_nodes), jnp.float32).at[dst, src].add(1.0)
    deg = jnp.clip(A.sum(axis=1, keepdims=True), 1.0, None)
    return A / deg


# ---------------------------------------------------------------------------
# GNN forward: mirrors the PyTorch module
#   x_dict = {k: conv1(x).relu()}  ->  {k: conv2(x)}
# All node types are stacked and processed by ONE fused pallas_call.
# ---------------------------------------------------------------------------
def gnn_forward(params, x_dict, edge_index_dict):
    # The module passes edge_index_dict straight into SAGEConv; semantically the
    # (single) edge index it contains is applied to every node-feature tensor.
    edge_index = next(iter(edge_index_dict.values()))

    keys = list(x_dict.keys())
    xs = jnp.stack([x_dict[k] for k in keys], axis=0)      # (T, N, C)
    T, N, C = xs.shape

    # Hoisted: identical adjacency for every node type.
    A = build_mean_adjacency(edge_index, N)

    H = params["w1_l"].shape[1]
    O = params["w2_l"].shape[1]
    Hp = _round_up(H, 128)
    Op = _round_up(O, 128)

    # Lane-padded, concatenated weights: [W_l | W_r].
    W1 = jnp.concatenate(
        [_pad2(params["w1_l"], C, Hp), _pad2(params["w1_r"], C, Hp)], axis=1
    )                                                       # (C, 2*Hp)
    b1 = _pad2(params["b1"].reshape(1, H), 1, Hp)           # (1, Hp)
    W2 = jnp.concatenate(
        [_pad2(params["w2_l"], Hp, Op), _pad2(params["w2_r"], Hp, Op)], axis=1
    )                                                       # (Hp, 2*Op)
    b2 = _pad2(params["b2"].reshape(1, O), 1, Op)           # (1, Op)

    flops = T * (
        2 * N * C * (2 * Hp)      # y1
        + 2 * N * N * Hp          # A @ y1_l
        + 2 * N * Hp * (2 * Op)   # y2
        + 2 * N * N * Op          # A @ y2_l
    )
    bytes_accessed = 4 * (
        N * N + T * N * C + C * 2 * Hp + Hp + Hp * 2 * Op + Op + T * N * Op
    )

    kernel = functools.partial(_gnn_kernel, h_pad=Hp, o_pad=Op)
    out_pad = pl.pallas_call(
        kernel,
        out_shape=jax.ShapeDtypeStruct((T, N, Op), xs.dtype),
        grid=(T,),
        in_specs=[
            pl.BlockSpec((N, N), lambda t: (0, 0)),            # A (shared)
            pl.BlockSpec((1, N, C), lambda t: (t, 0, 0)),      # X for node type t
            pl.BlockSpec((C, 2 * Hp), lambda t: (0, 0)),       # [W1_l | W1_r]
            pl.BlockSpec((1, Hp), lambda t: (0, 0)),           # b1
            pl.BlockSpec((Hp, 2 * Op), lambda t: (0, 0)),      # [W2_l | W2_r]
            pl.BlockSpec((1, Op), lambda t: (0, 0)),           # b2
        ],
        out_specs=pl.BlockSpec((1, N, Op), lambda t: (t, 0, 0)),
        compiler_params=pltpu.CompilerParams(
            dimension_semantics=("parallel",),
        ),
        cost_estimate=pl.CostEstimate(
            flops=flops, transcendentals=0, bytes_accessed=bytes_accessed
        ),
    )(A, xs, W1, b1, W2, b2)

    return {k: out_pad[i, :, :O] for i, k in enumerate(keys)}


# Pure-JAX reference for correctness checking.
def gnn_reference(params, x_dict, edge_index_dict):
    edge_index = next(iter(edge_index_dict.values()))
    out = {}
    for k, x in x_dict.items():
        A = build_mean_adjacency(edge_index, x.shape[0])
        h = (A @ x) @ params["w1_l"] + x @ params["w1_r"] + params["b1"]
        h = jnp.maximum(h, 0.0)
        out[k] = (A @ h) @ params["w2_l"] + h @ params["w2_r"] + params["b2"]
    return out


if __name__ == "__main__":
    key = jax.random.PRNGKey(0)
    num_nodes = 32
    in_channels = 16
    hidden_channels = 32
    num_classes = 8
    num_edges = 96

    keys = jax.random.split(key, 10)

    # Deterministic "checkpoint-free" parameters (SAGEConv has lin_l + lin_r + bias).
    def glorot(k, shape):
        fan_in, fan_out = shape
        s = jnp.sqrt(6.0 / (fan_in + fan_out))
        return jax.random.uniform(k, shape, jnp.float32, -s, s)

    params = {
        "w1_l": glorot(keys[0], (in_channels, hidden_channels)),
        "w1_r": glorot(keys[1], (in_channels, hidden_channels)),
        "b1": jnp.zeros((hidden_channels,), jnp.float32),
        "w2_l": glorot(keys[2], (hidden_channels, num_classes)),
        "w2_r": glorot(keys[3], (hidden_channels, num_classes)),
        "b2": jnp.zeros((num_classes,), jnp.float32),
    }

    # Two node types, one edge relation (small synthetic heterogeneous input).
    x_dict = {
        "paper": jax.random.normal(keys[4], (num_nodes, in_channels), jnp.float32),
        "author": jax.random.normal(keys[5], (num_nodes, in_channels), jnp.float32),
    }
    edge_index = jnp.stack(
        [
            jax.random.randint(keys[6], (num_edges,), 0, num_nodes),
            jax.random.randint(keys[7], (num_edges,), 0, num_nodes),
        ],
        axis=0,
    ).astype(jnp.int32)
    edge_index_dict = {("paper", "cites", "paper"): edge_index}

    out = gnn_forward(params, x_dict, edge_index_dict)
    jax.block_until_ready(out)

    ref = gnn_reference(params, x_dict, edge_index_dict)
    for k in out:
        assert out[k].shape == (num_nodes, num_classes), out[k].shape
        assert jnp.allclose(out[k], ref[k], atol=1e-4, rtol=1e-4), k

    print("KERNEL_OK")
</pallas_src>

<mosaic_0001>
module attributes {stable_mosaic.version = 11 : i64} {
  func.func @_gnn_kernel(%arg0: i32, %arg1: memref<32x32xf32, #tpu.memory_space<vmem>>, %arg2: memref<1x32x16xf32, #tpu.memory_space<vmem>>, %arg3: memref<16x256xf32, #tpu.memory_space<vmem>>, %arg4: memref<1x128xf32, #tpu.memory_space<vmem>>, %arg5: memref<128x256xf32, #tpu.memory_space<vmem>>, %arg6: memref<1x128xf32, #tpu.memory_space<vmem>>, %arg7: memref<1x32x128xf32, #tpu.memory_space<vmem>>) attributes {dimension_semantics = [#tpu.dimension_semantics<parallel>], iteration_bounds = array<i64: 2>, scalar_prefetch = 0 : i64, scratch_operands = 0 : i64, tpu.core_type = #tpu.core_type<tc>, window_params = [{pipeline_mode = #tpu.pipeline_mode<synchronous>, transform_indices = @transform_0, window_bounds = array<i64: 32, 32>}, {transform_indices = @transform_1, window_bounds = array<i64: 1, 32, 16>}, {pipeline_mode = #tpu.pipeline_mode<synchronous>, transform_indices = @transform_2, window_bounds = array<i64: 16, 256>}, {pipeline_mode = #tpu.pipeline_mode<synchronous>, transform_indices = @transform_3, window_bounds = array<i64: 1, 128>}, {pipeline_mode = #tpu.pipeline_mode<synchronous>, transform_indices = @transform_4, window_bounds = array<i64: 128, 256>}, {pipeline_mode = #tpu.pipeline_mode<synchronous>, transform_indices = @transform_5, window_bounds = array<i64: 1, 128>}, {transform_indices = @transform_6, window_bounds = array<i64: 1, 32, 128>}]} {
    %c0 = arith.constant 0 : index
    %c0_0 = arith.constant 0 : index
    %0 = vector.load %arg1[%c0, %c0_0] : memref<32x32xf32, #tpu.memory_space<vmem>>, vector<32x32xf32>
    %c0_1 = arith.constant 0 : index
    %c0_2 = arith.constant 0 : index
    %c0_3 = arith.constant 0 : index
    %1 = vector.load %arg2[%c0_1, %c0_2, %c0_3] : memref<1x32x16xf32, #tpu.memory_space<vmem>>, vector<1x32x16xf32>
    %2 = vector.shape_cast %1 : vector<1x32x16xf32> to vector<32x16xf32>
    %c0_4 = arith.constant 0 : index
    %c0_5 = arith.constant 0 : index
    %3 = vector.load %arg3[%c0_4, %c0_5] : memref<16x256xf32, #tpu.memory_space<vmem>>, vector<16x256xf32>
    %cst = arith.constant dense<0.000000e+00> : vector<32x256xf32>
    %4 = tpu.matmul %2, %3, %cst {dimension_numbers = #tpu.dot_dimension_numbers<[1], [0], [0], [1], [0, 0, 1, 1], [], []>} : vector<32x16xf32>, vector<16x256xf32>, vector<32x256xf32> -> vector<32x256xf32>
    %5 = vector.extract_strided_slice %4 {offsets = [0, 0], sizes = [32, 128], strides = [1, 1]} : vector<32x256xf32> to vector<32x128xf32>
    %cst_6 = arith.constant dense<0.000000e+00> : vector<32x128xf32>
    %6 = tpu.matmul %0, %5, %cst_6 {dimension_numbers = #tpu.dot_dimension_numbers<[1], [0], [0], [1], [0, 0, 1, 1], [], []>} : vector<32x32xf32>, vector<32x128xf32>, vector<32x128xf32> -> vector<32x128xf32>
    %7 = vector.extract_strided_slice %4 {offsets = [0, 128], sizes = [32, 128], strides = [1, 1]} : vector<32x256xf32> to vector<32x128xf32>
    %8 = arith.addf %6, %7 : vector<32x128xf32>
    %c0_7 = arith.constant 0 : index
    %c0_8 = arith.constant 0 : index
    %9 = vector.load %arg4[%c0_7, %c0_8] : memref<1x128xf32, #tpu.memory_space<vmem>>, vector<1x128xf32>
    %10 = vector.broadcast %9 : vector<1x128xf32> to vector<32x128xf32>
    %11 = arith.addf %8, %10 : vector<32x128xf32>
    %cst_9 = arith.constant 0.000000e+00 : f32
    %12 = vector.broadcast %cst_9 : f32 to vector<32x128xf32>
    %13 = arith.maximumf %11, %12 : vector<32x128xf32>
    %c0_10 = arith.constant 0 : index
    %c0_11 = arith.constant 0 : index
    %14 = vector.load %arg5[%c0_10, %c0_11] : memref<128x256xf32, #tpu.memory_space<vmem>>, vector<128x256xf32>
    %cst_12 = arith.constant dense<0.000000e+00> : vector<32x256xf32>
    %15 = tpu.matmul %13, %14, %cst_12 {dimension_numbers = #tpu.dot_dimension_numbers<[1], [0], [0], [1], [0, 0, 1, 1], [], []>} : vector<32x128xf32>, vector<128x256xf32>, vector<32x256xf32> -> vector<32x256xf32>
    %16 = vector.extract_strided_slice %15 {offsets = [0, 0], sizes = [32, 128], strides = [1, 1]} : vector<32x256xf32> to vector<32x128xf32>
    %cst_13 = arith.constant dense<0.000000e+00> : vector<32x128xf32>
    %17 = tpu.matmul %0, %16, %cst_13 {dimension_numbers = #tpu.dot_dimension_numbers<[1], [0], [0], [1], [0, 0, 1, 1], [], []>} : vector<32x32xf32>, vector<32x128xf32>, vector<32x128xf32> -> vector<32x128xf32>
    %18 = vector.extract_strided_slice %15 {offsets = [0, 128], sizes = [32, 128], strides = [1, 1]} : vector<32x256xf32> to vector<32x128xf32>
    %19 = arith.addf %17, %18 : vector<32x128xf32>
    %c0_14 = arith.constant 0 : index
    %c0_15 = arith.constant 0 : index
    %20 = vector.load %arg6[%c0_14, %c0_15] : memref<1x128xf32, #tpu.memory_space<vmem>>, vector<1x128xf32>
    %21 = vector.broadcast %20 : vector<1x128xf32> to vector<32x128xf32>
    %22 = arith.addf %19, %21 : vector<32x128xf32>
    %c0_16 = arith.constant 0 : index
    %c0_17 = arith.constant 0 : index
    %c0_18 = arith.constant 0 : index
    %23 = vector.load %arg7[%c0_16, %c0_17, %c0_18] : memref<1x32x128xf32, #tpu.memory_space<vmem>>, vector<1x32x128xf32>
    %24 = vector.shape_cast %23 : vector<1x32x128xf32> to vector<32x128xf32>
    %25 = vector.shape_cast %22 : vector<32x128xf32> to vector<1x32x128xf32>
    tpu.vector_store %arg7[%c0_16, %c0_17, %c0_18], %25 {strides = array<i32>} : memref<1x32x128xf32, #tpu.memory_space<vmem>>, vector<1x32x128xf32>,
    return
  }
  func.func @transform_0(%arg0: i32) -> (i32, i32) {
    %c0_i32 = arith.constant 0 : i32
    %c0_i32_0 = arith.constant 0 : i32
    %c0_i32_1 = arith.constant 0 : i32
    return %c0_i32, %c0_i32_0 : i32, i32
  }
  func.func @transform_1(%arg0: i32) -> (i32, i32, i32) {
    %c0_i32 = arith.constant 0 : i32
    %c0_i32_0 = arith.constant 0 : i32
    %c0_i32_1 = arith.constant 0 : i32
    return %arg0, %c0_i32, %c0_i32_0 : i32, i32, i32
  }
  func.func @transform_2(%arg0: i32) -> (i32, i32) {
    %c0_i32 = arith.constant 0 : i32
    %c0_i32_0 = arith.constant 0 : i32
    %c0_i32_1 = arith.constant 0 : i32
    return %c0_i32, %c0_i32_0 : i32, i32
  }
  func.func @transform_3(%arg0: i32) -> (i32, i32) {
    %c0_i32 = arith.constant 0 : i32
    %c0_i32_0 = arith.constant 0 : i32
    %c0_i32_1 = arith.constant 0 : i32
    return %c0_i32, %c0_i32_0 : i32, i32
  }
  func.func @transform_4(%arg0: i32) -> (i32, i32) {
    %c0_i32 = arith.constant 0 : i32
    %c0_i32_0 = arith.constant 0 : i32
    %c0_i32_1 = arith.constant 0 : i32
    return %c0_i32, %c0_i32_0 : i32, i32
  }
  func.func @transform_5(%arg0: i32) -> (i32, i32) {
    %c0_i32 = arith.constant 0 : i32
    %c0_i32_0 = arith.constant 0 : i32
    %c0_i32_1 = arith.constant 0 : i32
    return %c0_i32, %c0_i32_0 : i32, i32
  }
  func.func @transform_6(%arg0: i32) -> (i32, i32, i32) {
    %c0_i32 = arith.constant 0 : i32
    %c0_i32_0 = arith.constant 0 : i32
    %c0_i32_1 = arith.constant 0 : i32
    return %arg0, %c0_i32, %c0_i32_0 : i32, i32, i32
  }
}

</mosaic_0001>

<bundles_post_ra>
// kernel: tpu_custom_call.1
= control target key start
LH: loop header
LB: loop body
LE: loop exit
PB: predicated region body
PF: predicated region fallthrough
CT: control target
= control target key end

     0   :  { %11 = vsyncpa [#allocation3], 0  ;;  %s1308_s0 = inlined_call_operand.vmem [shape: f32[32,32], index: 0, kind: input, shape index: {}]   ;;  %s1309_s1 = inlined_call_operand.vmem [shape: f32[2,32,16], index: 1, kind: input, shape index: {}]   ;;  %s1310_s2 = inlined_call_operand.vmem [shape: f32[16,256], index: 2, kind: input, shape index: {}]   ;;  %s1311_s3 = inlined_call_operand.vmem [shape: f32[1,128], index: 3, kind: input, shape index: {}]   ;;  %s1312_s4 = inlined_call_operand.hbm [shape: f32[128,256], index: 4, kind: input, shape index: {}]   ;;  %s1313_s5 = inlined_call_operand.vmem [shape: f32[1,128], index: 5, kind: input, shape index: {}]   ;;  %s1314_s6 = inlined_call_operand.hbm [shape: f32[2,32,128], index: 6, kind: output, shape index: {}]  }
   0x1   :  { %12 = vsyncpa [#allocation4], 0 }
   0x2   :  { %14 = vsyncpa [#allocation4 + $0x1], 0  ;;  %s1120_s21 = smov 0   ;;  %s1122_s22 = smov 0  }
   0x3   :  { %s1124_s23 = smov 0   ;;  %s1126_s24 = smov 0  }
   0x4 LB: > { %s1141_s25 = sadd.s32 4294967295, %s1076_s24   ;;  %s801_s26 = sadd.s32 4294967294, %s1076_s24   ;;  %s1076_s24 = sphi %s1126_s24, %s1330_s24   ;;  %s1072_s23 = sphi %s1124_s23, %s1329_s23   ;;  %s1068_s22 = sphi %s1122_s22, %s1328_s22   ;;  %s1064_s21 = sphi %s1120_s21, %s1327_s21  }
   0x5   : > { %s1145_s27 = sadd.s32 1, %s1076_s24   ;;  %s158_s28 = sadd.s32 1, %s1072_s23 }
   0x6   : > { %s155_s29 = ssub.s32 %s1076_s24, %s1145_s27  ;;  %p168_p0 = scmp.ne.s32.totalorder %s1072_s23, %s1068_s22 }
   0x7   : > { %p156_p1 = scmp.eq.s32.totalorder %s155_s29, 0  ;;  %p169_p2 = scmp.eq.s32.totalorder %s1141_s25, 1 }
   0x8   : > { %p174_p3 = scmp.ne.s32.totalorder %s1068_s22, %s1064_s21  ;;  %p175_p4 = scmp.eq.s32.totalorder %s801_s26, 1 }
   0x9   : > { %s1156_s30 = scalar_select %p156_p1, %s1072_s23, %s158_s28  }
   0xa   : > { %p1158_p5 = por %p169_p2, %p168_p0  ;;  %p1162_p6 = por %p175_p4, %p174_p3 }
   0xb   : > { %p802_p7 = scmp.ge.s32.totalorder %s1076_s24, 1  ;;  %p182_p8 = scmp.lt.s32.totalorder %s1076_s24, 3 }
   0xc   : > { %s1318_s7 = scalar_select %p1158_p5, 1, 0 }
   0xd   : > { %s1319_s8 = scalar_select %p1162_p6, 1, 0 }
   0xe   : > { %p1315_p9 = scmp.eq.s32.totalorder %s1141_s25, 0  ;;  %p1169_p10 = pnand %p802_p7, %p182_p8 }
   0xf   : > { %s1078_s10 = smov [#allocation2]   ;;  %s982_s15 = scalar_lea.hbm %s1312_s4, 4096 }
  0x10   : > { %s1320_s9 = scalar_select %p1169_p10, 1, 0 }
  0x11   : > { %s203_s11 = sshll.u32 %s1078_s10, 4  ;;  %p933_p11 = pneg %p1169_p10  ;;  %s204_s11 = int_to_ptr.vmem [resolvable:$true] %s203_s11 }
  0x12   : > { %p983_p13 = scmp.ne.s32.totalorder %s1312_s4, %s982_s15  ;;  %p989_p3 = scmp.lt.u32.totalorder %s982_s15, %s1312_s4 }
  0x13   : > { %p1177_p12 = pnand %p1315_p9, %p933_p11 }
  0x15   : > { %p984_p0 = pneg %p1177_p12 }
  0x17   : > { %p985_p1 = pnand %p984_p0, %p983_p13 }
  0x19   : > { %p986_p2 = pneg %p985_p1 }
  0x1b   : > { %p991_p4 = pnand %p989_p3, %p986_p2 }
  0x1d   : > { %994 = shalt.err (!%p991_p4)
}
  0x1e   : > { %s995_s20 = scalar_lea.vmem %s204_s11, 4096  ;;  %p1003_p9 = scmp.lt.s32.totalorder %s204_s11, %s204_s11 }
  0x1f   : > { %p996_p7 = scmp.ne.s32.totalorder %s204_s11, %s995_s20  ;;  %p1004_p6 = scmp.lt.s32.totalorder %s995_s20, %s995_s20 }
  0x21   : > { %p998_p8 = pnand %p996_p7, %p984_p0  ;;  %p1005_p5 = por %p1004_p6, %p1003_p9 }
  0x23   : > { %p999_p11 = pneg %p998_p8 }
  0x25   : > { %p1006_p10 = pnand %p1005_p5, %p999_p11 }
  0x27   : > { %1009 = shalt.err (!%p1006_p10)
}
  0x28   : > { %s1079_s26 = smov 256   ;;  %s1080_s28 = smov 16  }
  0x29   : > { %936 = dma.hbm_to_vmem [thread:$0]  (!%p1177_p12), %s1312_s4, 4096, %s204_s11, [#allocation3], %s1079_s26, %s1079_s26, %s1080_s28  }
  0x2a   : > { %p1322_p13 = scmp.ne.s32.totalorder %s1320_s9, 0 }
  0x2b   : > { %p1323_p1 = scmp.eq.s32.totalorder (!%p1322_p13), %s1141_s25, 0 }
  0x2c   : > { %230 = sbr.rel (%p1322_p13) target bundleno = 974 (0x3ce), region = 44 }
  0x33   : > { %1055 = dma.done.wait (%p1323_p1), [#allocation3], 4096   ;;  %p1324_p0 = pmov %p1323_p1 }
  0x34   : > { %p260_p5 = scmp.lt.s32.totalorder %s1141_s25, 1  ;;  %v1081_v0 = vmov 0.0   ;;  %v274_v1 = vld [vmem:[%s1310_s2 + $0x8] sm:$0xff]  ;;  %v276_v2 = vld [vmem:[%s1310_s2 + $0x18] sm:$0xff]  ;;  %v273_v3 = vld [vmem:[%s1310_s2] sm:$0xff]  ;;  %vm277_vm0 = vcmask 130048  }
  0x35   : > { %1057 = vsyncadd (%p1324_p0), [#allocation3], 4294963200  ;;  %354 = vmatprep.mubr.f32.mxu1 %v1081_v0  ;;  %588 = vmatprep.mubr.f32.mxu0 %v1081_v0  ;;  %v875_v4 = vpack.c.bf16 %v276_v2, %v274_v1  ;;  %v275_v5 = vld [vmem:[%s1310_s2 + $0x10] sm:$0xff]  ;;  %v1228_v11 = vld [vmem:[%s1308_s0] sm:$0xff]  ;;  %vm379_vm1 = vcmask 261120   ;;  %s257_s18 = sand.u32 1, %s1068_s22  }
  0x36   : > { %s261_s12 = scalar_select %p260_p5, %s1141_s25, 1  ;;  %v877_v6 = vpack.c.bf16 %v275_v5, %v273_v3  ;;  %v493_v12 = vld [vmem:[#allocation2 + $0x8] sm:$0xff]  ;;  %v495_v13 = vld [vmem:[#allocation2 + $0x18] sm:$0xff]  ;;  %v492_v14 = vld [vmem:[#allocation2] sm:$0xff] }
  0x37   : > { %876 = vmatprep.subr.bf16.mxu1 %v875_v4  ;;  %v887_v15 = vpack.c.bf16 %v495_v13, %v493_v12  ;;  %v494_v16 = vld [vmem:[#allocation2 + $0x10] sm:$0xff]  ;;  %v497_v17 = vld [vmem:[#allocation2 + $0x28] sm:$0xff]  ;;  %v499_v18 = vld [vmem:[#allocation2 + $0x38] sm:$0xff]  ;;  %s807_s19 = sshll.u32 %s257_s18, 5  ;;  %s830_s10 = sshll.u32 %s1141_s25, 9 }
  0x38   : > { %s829_s13 = sshll.u32 %s261_s12, 5  ;;  %878 = vmatpush1.bf16.msra.mxu1 %v877_v6  ;;  %v889_v19 = vpack.c.bf16 %v494_v16, %v492_v14  ;;  %v891_v20 = vpack.c.bf16 %v499_v18, %v497_v17  ;;  %v496_v21 = vld [vmem:[#allocation2 + $0x20] sm:$0xff]  ;;  %v498_v22 = vld [vmem:[#allocation2 + $0x30] sm:$0xff]  ;;  %v501_v23 = vld [vmem:[#allocation2 + $0x48] sm:$0xff]  ;;  %s1265_s11 = scalar_lea.hbm %s1314_s6, %s830_s10 }
  0x39   : > { %s264_s28 = scalar_lea.vmem %s1309_s1, %s829_s13  ;;  %888 = vmatprep.subr.bf16.mxu0 %v887_v15  ;;  %v503_v24 = vld [vmem:[#allocation2 + $0x58] sm:$0xff]  ;;  %v893_v25 = vpack.c.bf16 %v498_v22, %v496_v21  ;;  %v500_v27 = vld [vmem:[#allocation2 + $0x40] sm:$0xff]  ;;  %v502_v28 = vld [vmem:[#allocation2 + $0x50] sm:$0xff]  ;;  %s1267_s25 = scalar_lea.sflag [#allocation4], %s257_s18 }
  0x3a   : > { %v269_v7 = vld [vmem:[%s264_s28] sm:$0xff]  ;;  %v270_v8 = vld [vmem:[%s264_s28 + $0x8] sm:$0xff]  ;;  %v271_v9 = vld [vmem:[%s264_s28 + $0x10] sm:$0xff]  ;;  %890 = vmatpush1.bf16.msra.mxu0 %v889_v19  ;;  %v895_v26 = vpack.c.bf16 %v503_v24, %v501_v23  ;;  %v897_v31 = vpack.c.bf16 %v502_v28, %v500_v27  ;;  %p1325_p9 = scmp.ne.s32.totalorder %s1318_s7, 0  ;;  %s1082_s9 = smov [#allocation5]  }
  0x3b   : > { %810 = vmatmul.mubr.msk.f32.vlgmr.msra.gmra.mrb[0].mxu1 %vm277_vm0, %v269_v7  ;;  %v272_v10 = vld [vmem:[%s264_s28 + $0x18] sm:$0xff]  ;;  %892 = vmatprep.subr.bf16.mxu0 %v891_v20  ;;  %v505_v29 = vld [vmem:[#allocation2 + $0x68] sm:$0xff]  ;;  %v504_v33 = vld [vmem:[#allocation2 + $0x60] sm:$0xff]  ;;  %s259_s28 = scalar_lea.vmem [#allocation5], %s807_s19  ;;  %s1014_s15 = sshll.u32 %s1082_s9, 4  ;;  %s1015_s15 = int_to_ptr.vmem [resolvable:$false] %s1014_s15 }
  0x3c   : > { %360 = vmatprep.mubr.f32.mxu1 %v1081_v0  ;;  %v507_v30 = vld [vmem:[#allocation2 + $0x78] sm:$0xff]  ;;  %v506_v34 = vld [vmem:[#allocation2 + $0x70] sm:$0xff]  ;;  %v509_v35 = vld [vmem:[#allocation2 + $0x88] sm:$0xff]  ;;  %s727_s29 = sshll.u32 %s259_s28, 4  ;;  %s1016_s16 = scalar_lea.vmem %s1015_s15, 1024  ;;  %s1260_s29 = int_to_ptr.vmem [resolvable:$true] %s727_s29 }
  0x3d   : > { %v899_v32 = vpack.c.bf16 %v507_v30, %v505_v29  ;;  %v511_v36 = vld [vmem:[#allocation2 + $0x98] sm:$0xff]  ;;  %v901_v37 = vpack.c.bf16 %v506_v34, %v504_v33  ;;  %v508_v39 = vld [vmem:[#allocation2 + $0x80] sm:$0xff]  ;;  %v510_v40 = vld [vmem:[#allocation2 + $0x90] sm:$0xff]  ;;  %s1010_s14 = scalar_lea.vmem %s1260_s29, 512  ;;  %p1017_p2 = scmp.lt.s32.totalorder %s1260_s29, %s1015_s15 }
  0x3e   : > { %894 = vmatpush1.bf16.msra.mxu0 %v893_v25  ;;  %v903_v38 = vpack.c.bf16 %v511_v36, %v509_v35  ;;  %v513_v41 = vld [vmem:[#allocation2 + $0xa8] sm:$0xff]  ;;  %v515_v42 = vld [vmem:[#allocation2 + $0xb8] sm:$0xff]  ;;  %v905_v43 = vpack.c.bf16 %v510_v40, %v508_v39  ;;  %v512_v45 = vld [vmem:[#allocation2 + $0xa0] sm:$0xff]  ;;  %p1011_p6 = scmp.ne.s32.totalorder %s1260_s29, %s1010_s14  ;;  %p1018_p3 = scmp.lt.s32.totalorder %s1016_s16, %s1010_s14 }
  0x3f   : > { %811 = vmatmul.mubr.msk.f32.gmra.mrb[2].mxu1 %vm277_vm0, %v270_v8  ;;  %896 = vmatprep.subr.bf16.mxu0 %v895_v26  ;;  %v907_v44 = vpack.c.bf16 %v515_v42, %v513_v41  ;;  %v514_v46 = vld [vmem:[#allocation2 + $0xb0] sm:$0xff]  ;;  %v266_v58 = vld [vmem:[%s1308_s0 + $0x8] sm:$0xff]  ;;  %v268_v60 = vld [vmem:[%s1308_s0 + $0x18] sm:$0xff] }
  0x40   : > { %366 = vmatprep.mubr.f32.mxu1 %v1081_v0  ;;  %v909_v47 = vpack.c.bf16 %v514_v46, %v512_v45  ;;  %v267_v59 = vld [vmem:[%s1308_s0 + $0x10] sm:$0xff]  ;;  %v517_v61 = vld [vmem:[#allocation2 + $0xc8] sm:$0xff]  ;;  %v519_v62 = vld [vmem:[#allocation2 + $0xd8] sm:$0xff]  ;;  %p1012_p10 = pnand %p1011_p6, %p1325_p9  ;;  %p1019_p4 = por %p1018_p3, %p1017_p2 }
  0x41   : > { %v911_v63 = vpack.c.bf16 %v519_v62, %v517_v61  ;;  %v516_v1 = vld [vmem:[#allocation2 + $0xc0] sm:$0xff]  ;;  %v518_v2 = vld [vmem:[#allocation2 + $0xd0] sm:$0xff]  ;;  %v521_v4 = vld [vmem:[#allocation2 + $0xe8] sm:$0xff] }
  0x42   : > { %898 = vmatpush1.bf16.msra.mxu0 %v897_v31  ;;  %v913_v3 = vpack.c.bf16 %v518_v2, %v516_v1  ;;  %v523_v5 = vld [vmem:[#allocation2 + $0xf8] sm:$0xff]  ;;  %v520_v7 = vld [vmem:[#allocation2 + $0xe0] sm:$0xff]  ;;  %v522_v8 = vld [vmem:[#allocation2 + $0xf0] sm:$0xff]  ;;  %p1013_p12 = pneg %p1012_p10 }
  0x43   : > { %812 = vmatmul.mubr.msk.f32.gmra.mrb[4].mxu1 %vm277_vm0, %v271_v9  ;;  %900 = vmatprep.subr.bf16.mxu0 %v899_v32  ;;  %v915_v6 = vpack.c.bf16 %v523_v5, %v521_v4  ;;  %v917_v9 = vpack.c.bf16 %v522_v8, %v520_v7 }
  0x44   : > { %372 = vmatprep.mubr.f32.mxu1 %v1081_v0  ;;  %p1020_p7 = pnand %p1019_p4, %p1013_p12 }
  0x46   : > { %902 = vmatpush1.bf16.msra.mxu0 %v901_v37  ;;  %v823_v37 = vld [vmem:[%s1313_s5] ss:$0 sm:$0xff] }
  0x47   : > { %813 = vmatmul.mubr.msk.f32.gmra.mrb[6].mxu1 %vm277_vm0, %v272_v10  ;;  %904 = vmatprep.subr.bf16.mxu0 %v903_v38 }
  0x48   : > { %855 = vmatprep.mubr.msk.f32.mxu1 %vm379_vm1, %v1228_v11 }
  0x4a   : > { %906 = vmatpush1.bf16.msra.mxu0 %v905_v43 }
  0x4b   : > { %908 = vmatprep.subr.bf16.mxu0 %v907_v44 }
  0x4e   : > { %910 = vmatpush1.bf16.msra.mxu0 %v909_v47 }
  0x4f   : > { %912 = vmatprep.subr.bf16.mxu0 %v911_v63 }
  0x52   : > { %914 = vmatpush1.bf16.msra.mxu0 %v913_v3 }
  0x53   : > { %916 = vmatprep.subr.bf16.mxu0 %v915_v6 }
  0x56   : > { %918 = vmatpush1.bf16.msra.mxu0 %v917_v9 }
 0x10e   : > { %v356_v48 = vpop.f32.mrb[0].mxu1 }
 0x10f   : > { %v358_v49 = vpop.f32.mrb[1].mxu1 }
 0x112   : > { %v362_v50 = vpop.f32.mrb[2].mxu1 }
 0x113   : > { %v879_v51 = vpack.c.bf16 %v362_v50, %v356_v48  ;;  %v364_v52 = vpop.f32.mrb[3].mxu1 }
 0x115   : > { %880 = vmatprep.subr.bf16.mxu1 %v879_v51 }
 0x116   : > { %v368_v53 = vpop.f32.mrb[4].mxu1  ;;  %882 = vmatpush3.bf16.msra.mxu1 %v879_v51 }
 0x117   : > { %v370_v54 = vpop.f32.mrb[5].mxu1 }
 0x11a   : > { %v374_v55 = vpop.f32.mrb[6].mxu1 }
 0x11b   : > { %v883_v56 = vpack.c.bf16 %v374_v55, %v368_v53  ;;  %v376_v57 = vpop.f32.mrb[7].mxu1 }
 0x11d   : > { %884 = vmatprep.subr.bf16.mxu1 %v883_v56 }
 0x11e   : > { %886 = vmatpush3.bf16.msra.mxu1 %v883_v56 }
 0x121   : > { %856 = vmatmul.mubr.msk.f32.vlgmr.msra.gmra.mrb[8].mxu1 %vm379_vm1, %v266_v58 }
 0x122   : > { %858 = vmatprep.mubr.msk.f32.mxu1 %vm379_vm1, %v267_v59 }
 0x125   : > { %859 = vmatmul.mubr.msk.f32.gmra.mrb[10].mxu1 %vm379_vm1, %v268_v60 }
 0x126   : > { %869 = vmatprep.mubr.msk.f32.mxu1 %vm379_vm1, %v1228_v11  ;;  %v818_v11 = vld [vmem:[%s1311_s3] ss:$0 sm:$0xff] }
 0x1f4   : > { %v857_v10 = vpop.f32.mrb[8].mxu1 }
 0x1f5   : > { %v464_v12 = vadd.f32 %v857_v10, %v364_v52  ;;  %v458_v13 = vpop.f32.mrb[9].mxu1 }
 0x1f6   : > { %v459_v14 = vadd.f32 %v458_v13, %v358_v49 }
 0x1f7   : > { %v485_v19 = vadd.f32 %v818_v11, %v464_v12 }
 0x1f8   : > { %v484_v15 = vadd.f32 %v818_v11, %v459_v14  ;;  %v860_v16 = vpop.f32.mrb[10].mxu1 }
 0x1f9   : > { %v474_v17 = vadd.f32 %v860_v16, %v376_v57  ;;  %v468_v18 = vpop.f32.mrb[11].mxu1  ;;  %v489_v22 = vmax.f32 %v485_v19, 0.0 }
 0x1fa   : > { %v488_v20 = vmax.f32 %v484_v15, 0.0  ;;  %v469_v21 = vadd.f32 %v468_v18, %v370_v54 }
 0x1fb   : > { %v487_v24 = vadd.f32 %v818_v11, %v474_v17 }
 0x1fc   : > { %589 = vmatmul.mubr.f32.vlgmr.msra.gmra.mrb[0].mxu0 %v488_v20  ;;  %v486_v23 = vadd.f32 %v818_v11, %v469_v21 }
 0x1fd   : > { %594 = vmatprep.mubr.f32.mxu0 %v1081_v0  ;;  %v491_v26 = vmax.f32 %v487_v24, 0.0 }
 0x1fe   : > { %v490_v25 = vmax.f32 %v486_v23, 0.0 }
 0x200   : > { %595 = vmatmul.mubr.f32.gmra.mrb[2].mxu0 %v489_v22 }
 0x201   : > { %600 = vmatprep.mubr.f32.mxu0 %v1081_v0 }
 0x204   : > { %601 = vmatmul.mubr.f32.gmra.mrb[4].mxu0 %v490_v25 }
 0x205   : > { %606 = vmatprep.mubr.f32.mxu0 %v1081_v0 }
 0x208   : > { %607 = vmatmul.mubr.f32.gmra.mrb[6].mxu0 %v491_v26 }
 0x2cf   : > { %v590_v27 = vpop.f32.mrb[0].mxu0 }
 0x2d0   : > { %v592_v28 = vpop.f32.mrb[1].mxu0 }
 0x2d3   : > { %v596_v29 = vpop.f32.mrb[2].mxu0 }
 0x2d4   : > { %v919_v30 = vpack.c.bf16 %v596_v29, %v590_v27  ;;  %v598_v31 = vpop.f32.mrb[3].mxu0 }
 0x2d6   : > { %920 = vmatprep.subr.bf16.mxu1 %v919_v30 }
 0x2d7   : > { %v602_v32 = vpop.f32.mrb[4].mxu0  ;;  %922 = vmatpush3.bf16.msra.mxu1 %v919_v30 }
 0x2d8   : > { %v604_v33 = vpop.f32.mrb[5].mxu0 }
 0x2db   : > { %v608_v34 = vpop.f32.mrb[6].mxu0 }
 0x2dc   : > { %v923_v35 = vpack.c.bf16 %v608_v34, %v602_v32  ;;  %v610_v36 = vpop.f32.mrb[7].mxu0 }
 0x2de   : > { %924 = vmatprep.subr.bf16.mxu1 %v923_v35 }
 0x2df   : > { %926 = vmatpush3.bf16.msra.mxu1 %v923_v35 }
 0x2e2   : > { %870 = vmatmul.mubr.msk.f32.vlgmr.msra.gmra.mrb[12].mxu1 %vm379_vm1, %v266_v58 }
 0x2e3   : > { %872 = vmatprep.mubr.msk.f32.mxu1 %vm379_vm1, %v267_v59 }
 0x2e6   : > { %873 = vmatmul.mubr.msk.f32.gmra.mrb[14].mxu1 %vm379_vm1, %v268_v60 }
 0x3b5   : > { %v871_v0 = vpop.f32.mrb[12].mxu1 }
 0x3b6   : > { %v685_v38 = vadd.f32 %v871_v0, %v598_v31  ;;  %v679_v39 = vpop.f32.mrb[13].mxu1 }
 0x3b7   : > { %v680_v40 = vadd.f32 %v679_v39, %v592_v28 }
 0x3b8   : > { %v706_v41 = vadd.f32 %v823_v37, %v685_v38 }
 0x3b9   : > { %v705_v42 = vadd.f32 %v823_v37, %v680_v40  ;;  %v874_v43 = vpop.f32.mrb[14].mxu1 }
 0x3ba   : > { %710 = vst [vmem:[%s259_s28 + $0x8] sm:$0xff] %v706_v41  ;;  %v695_v44 = vadd.f32 %v874_v43, %v610_v36  ;;  %v689_v45 = vpop.f32.mrb[15].mxu1 }
 0x3bb   : > { %709 = vst [vmem:[%s259_s28] sm:$0xff] %v705_v42  ;;  %v690_v46 = vadd.f32 %v689_v45, %v604_v33 }
 0x3bc   : > { %v708_v47 = vadd.f32 %v823_v37, %v695_v44 }
 0x3bd   : > { %v707_v48 = vadd.f32 %v823_v37, %v690_v46 }
 0x3be   : > { %712 = vst [vmem:[%s259_s28 + $0x18] sm:$0xff] %v708_v47 }
 0x3bf   : > { %711 = vst [vmem:[%s259_s28 + $0x10] sm:$0xff] %v707_v48 }
 0x3c0   : > { %1023 = shalt.err (!%p1020_p7)
}
 0x3c1   : > { %s1024_s17 = scalar_lea.hbm %s1265_s11, 512  ;;  %s1028_s20 = scalar_lea.hbm %s1314_s6, 1024 }
 0x3c2   : > { %p1025_p8 = scmp.ne.s32.totalorder %s1265_s11, %s1024_s17  ;;  %p1029_p1 = scmp.lt.u32.totalorder %s1265_s11, %s1314_s6 }
 0x3c3   : > { %p1030_p0 = scmp.lt.u32.totalorder %s1028_s20, %s1024_s17  ;;  %p1032_p6 = scmp.lt.u32.totalorder %s1024_s17, %s1265_s11 }
 0x3c4   : > { %p1026_p11 = pnand %p1025_p8, %p1325_p9 }
 0x3c5   : > { %p1031_p5 = por %p1030_p0, %p1029_p1 }
 0x3c6   : > { %p1027_p13 = pneg %p1026_p11 }
 0x3c7   : > { %p1033_p10 = por %p1032_p6, %p1031_p5 }
 0x3c9   : > { %p1034_p12 = pnand %p1033_p10, %p1027_p13 }
 0x3cb   : > { %1037 = shalt.err (!%p1034_p12)
}
 0x3cc   : > { %s1083_s10 = smov 128   ;;  %s1084_s12 = smov 8  }
 0x3cd   : > { %931 = dma.vmem_to_hbm [thread:$0]  (%p1325_p9), %s1260_s29, 512, %s1265_s11, %s1267_s25, %s1083_s10, %s1083_s10, %s1084_s12  }
 0x3ce PF: > { %p943_p2 = scmp.ge.s32.totalorder %s1076_s24, 2  ;;  %s742_s13 = sand.u32 1, %s1064_s21  }
 0x3cf   : > { %p1326_p3 = scmp.ne.s32.totalorder %s1319_s8, 0  ;;  %s743_s14 = scalar_lea.sflag [#allocation4], %s742_s13 }
 0x3d1   : > { %p938_p4 = pnand %p943_p2, %p1326_p3 }
 0x3d3   : > { %1059 = dma.done.wait (!%p938_p4), %s743_s14, 512  }
 0x3d4   : > { %1061 = vsyncadd (!%p938_p4), %s743_s14, 4294966784  ;;  %p17_p7 = scmp.ge.s32.totalorder %s1145_s27, 4   ;;  %s1327_s21 = smov %s1068_s22 }
 0x3d5   : > { %s1328_s22 = smov %s1072_s23  ;;  %s1329_s23 = smov %s1156_s30 }
 0x3d6   : > { %s1330_s24 = smov %s1145_s27  ;;  %19 = sbr.rel (!%p17_p7) target bundleno = 4 (0x4), region = 84 }
 0x3dd   :  { %748 = vsyncpa [#allocation3], 1 }
 0x3de   :  { %750 = vsyncpa [#allocation3 + $0x1], 1 }
 0x3df   :  { %751 = vsyncpa [#allocation4], 1 }
 0x3e0   :  { %753 = vsyncpa [#allocation4 + $0x1], 1 }

</bundles_post_ra>
